<compile_context>
chip_gen: v6e
topology: v6e:2x2x1
jax: 0.10.0
libtpu: 0.0.40
codegen_flags: <defaults>
</compile_context>

<pallas_src>
import functools

import jax
import jax.numpy as jnp
from jax.experimental import pallas as pl
from jax.experimental.pallas import tpu as pltpu

LANE = 128
D_IN = 28 * 28                      # 784
D_H1, D_H2, D_H3, D_OUT = 50, 100, 50, 10
SUBLANE = 16                        # bf16 packs 16 sublanes / vreg


def _cdiv(a, b):
    return -(-a // b)


def _round_up(n, m):
    return ((n + m - 1) // m) * m


def _pad2(a, rows, cols):
    r, c = a.shape
    return jnp.pad(a, ((0, rows - r), (0, cols - c)))


def mlp_kernel(x_ref, w1_ref, wslab_ref, bslab_ref, out_ref):
    # x_ref:     (TILE_B, 784)  f32   (cast to bf16 in-kernel for the MXU)
    # w1_ref:    (784, 128)     bf16  (cols 50..127 zero)
    # wslab_ref: (384, 128)     bf16  rows [0:128)=w2, [128:256)=w3, [256:384)=w4
    # bslab_ref: (8, 128)       f32   rows 0..3 = b1..b4 (padded lanes zero)
    # out_ref:   (TILE_B, 128)  bf16  lane-dense logits slab
    x = x_ref[...].astype(jnp.bfloat16)          # VPU cast, hidden under DMA
    b = bslab_ref[...]
    b1, b2, b3, b4 = b[0:1], b[1:2], b[2:3], b[3:4]

    w2 = wslab_ref[0:128, :]
    w3 = wslab_ref[128:256, :]
    w4 = wslab_ref[256:384, :]

    # input_layer: bf16 MXU, f32 accumulate; activation math in f32 (EUP logistic)
    h = jax.nn.sigmoid(
        jnp.dot(x, w1_ref[...], preferred_element_type=jnp.float32) + b1)

    # hidden1 / hidden2: bf16 operands into the MXU, f32 accumulate + sigmoid
    h = jax.nn.sigmoid(
        jnp.dot(h.astype(jnp.bfloat16), w2, preferred_element_type=jnp.float32) + b2)
    h = jax.nn.sigmoid(
        jnp.dot(h.astype(jnp.bfloat16), w3, preferred_element_type=jnp.float32) + b3)

    # output_layer: logits (no activation), stored bf16 lane-dense
    out_ref[...] = (
        jnp.dot(h.astype(jnp.bfloat16), w4, preferred_element_type=jnp.float32) + b4
    ).astype(out_ref.dtype)


@functools.partial(jax.jit, static_argnames=("tile_b",))
def our_mlp_forward(x_nchw, params, tile_b=1024):
    """x_nchw: (B, 1, 28, 28) float32.  Returns logits (B, 10) float32."""
    B = x_nchw.shape[0]
    x2d = x_nchw.reshape(B, D_IN)                 # nn.Flatten(); stays f32 (no bf16 copy)

    # Adaptive batch tiling:
    #  - tiles as large as tile_b (amortize ~0.35us per grid step),
    #  - at least 2 grid steps when the batch allows (v7x has 2 TCs; "parallel" axis),
    #  - TILE_B a multiple of 16 (bf16 output sublane packing),
    #  - padding waste bounded by ~16*n_steps rows instead of up to TILE_B-1.
    B_al = _round_up(max(B, SUBLANE), SUBLANE)
    n_steps = max(_cdiv(B_al, tile_b), 2 if B_al >= 2 * SUBLANE else 1)
    TILE_B = _round_up(_cdiv(B_al, n_steps), SUBLANE)
    B_pad = TILE_B * n_steps
    if B_pad != B:
        x2d = jnp.pad(x2d, ((0, B_pad - B), (0, 0)))

    (w1, b1), (w2, b2), (w3, b3), (w4, b4) = params

    # Lane-pad everything to 128; weights in bf16 (MXU fast path on all chips),
    # biases in f32 (added to the f32 accumulator).
    w1p = _pad2(w1, D_IN, LANE).astype(jnp.bfloat16)                  # (784, 128)
    w_slab = jnp.concatenate(
        [_pad2(w2, LANE, LANE), _pad2(w3, LANE, LANE), _pad2(w4, LANE, LANE)],
        axis=0).astype(jnp.bfloat16)                                  # (384, 128)
    b_slab = jnp.concatenate(
        [_pad2(b1, 1, LANE), _pad2(b2, 1, LANE), _pad2(b3, 1, LANE), _pad2(b4, 1, LANE),
         jnp.zeros((4, LANE), jnp.float32)],
        axis=0).astype(jnp.float32)                                   # (8, 128)

    out = pl.pallas_call(
        mlp_kernel,
        out_shape=jax.ShapeDtypeStruct((B_pad, LANE), jnp.bfloat16),
        grid=(n_steps,),
        in_specs=[
            pl.BlockSpec((TILE_B, D_IN), lambda i: (i, 0)),     # x tile, pipelined
            pl.BlockSpec((D_IN, LANE), lambda i: (0, 0)),       # w1: fetched once, resident
            pl.BlockSpec((3 * LANE, LANE), lambda i: (0, 0)),   # w2|w3|w4 slab, resident
            pl.BlockSpec((8, LANE), lambda i: (0, 0)),          # bias slab, resident
        ],
        out_specs=pl.BlockSpec((TILE_B, LANE), lambda i: (i, 0)),
        compiler_params=pltpu.CompilerParams(
            dimension_semantics=("parallel",),                  # megacore on v7x
            vmem_limit_bytes=32 * 1024 * 1024,                  # plenty; kernel uses <~15 MB
        ),
    )(x2d, w1p, w_slab, b_slab)

    return out[:B, :D_OUT].astype(jnp.float32)


def init_linear(key, fan_in, fan_out):
    """Deterministic PyTorch-style init; weight returned as (in, out)."""
    kw, kb = jax.random.split(key)
    bound = 1.0 / jnp.sqrt(jnp.float32(fan_in))
    w = jax.random.uniform(kw, (fan_in, fan_out), jnp.float32, -bound, bound)
    b = jax.random.uniform(kb, (1, fan_out), jnp.float32, -bound, bound)
    return w, b


if __name__ == "__main__":
    root = jax.random.PRNGKey(0)
    k_x, k1, k2, k3, k4 = jax.random.split(root, 5)

    # Module-implied shapes: Linear(784,50), Linear(50,100), Linear(100,50), Linear(50,10)
    params = (
        init_linear(k1, D_IN, D_H1),
        init_linear(k2, D_H1, D_H2),
        init_linear(k3, D_H2, D_H3),
        init_linear(k4, D_H3, D_OUT),
    )

    B = 8
    x = jax.random.normal(k_x, (B, 1, 28, 28), jnp.float32)     # NCHW, like MNIST

    logits = jax.block_until_ready(our_mlp_forward(x, params))

    # Pure-JAX f32 reference (kernel uses bf16 MXU operands + bf16 output, so
    # compare with a moderate absolute tolerance).
    def ref(x_nchw):
        h = x_nchw.reshape(x_nchw.shape[0], -1)
        (w1, b1), (w2, b2), (w3, b3), (w4, b4) = params
        h = jax.nn.sigmoid(h @ w1 + b1)
        h = jax.nn.sigmoid(h @ w2 + b2)
        h = jax.nn.sigmoid(h @ w3 + b3)
        return h @ w4 + b4

    r = ref(x)
    assert logits.shape == (B, D_OUT) and logits.dtype == jnp.float32
    err = jnp.max(jnp.abs(logits - r))
    assert err < 3e-2, f"max abs err {err}"
    print("KERNEL_OK")
</pallas_src>

<mosaic_0001>
module attributes {stable_mosaic.version = 11 : i64} {
  func.func @mlp_kernel(%arg0: i32, %arg1: memref<16x784xf32, #tpu.memory_space<vmem>>, %arg2: memref<784x128xbf16, #tpu.memory_space<vmem>>, %arg3: memref<384x128xbf16, #tpu.memory_space<vmem>>, %arg4: memref<8x128xf32, #tpu.memory_space<vmem>>, %arg5: memref<16x128xbf16, #tpu.memory_space<vmem>>) attributes {dimension_semantics = [#tpu.dimension_semantics<parallel>], iteration_bounds = array<i64: 1>, scalar_prefetch = 0 : i64, scratch_operands = 0 : i64, tpu.core_type = #tpu.core_type<tc>, window_params = [{transform_indices = @transform_0, window_bounds = array<i64: 16, 784>}, {pipeline_mode = #tpu.pipeline_mode<synchronous>, transform_indices = @transform_1, window_bounds = array<i64: 784, 128>}, {pipeline_mode = #tpu.pipeline_mode<synchronous>, transform_indices = @transform_2, window_bounds = array<i64: 384, 128>}, {pipeline_mode = #tpu.pipeline_mode<synchronous>, transform_indices = @transform_3, window_bounds = array<i64: 8, 128>}, {transform_indices = @transform_4, window_bounds = array<i64: 16, 128>}]} {
    %c0 = arith.constant 0 : index
    %c0_0 = arith.constant 0 : index
    %0 = vector.load %arg1[%c0, %c0_0] : memref<16x784xf32, #tpu.memory_space<vmem>>, vector<16x784xf32>
    %1 = arith.truncf %0 : vector<16x784xf32> to vector<16x784xbf16>
    %c0_1 = arith.constant 0 : index
    %c0_2 = arith.constant 0 : index
    %2 = vector.load %arg4[%c0_1, %c0_2] : memref<8x128xf32, #tpu.memory_space<vmem>>, vector<8x128xf32>
    %3 = vector.extract_strided_slice %2 {offsets = [0, 0], sizes = [1, 128], strides = [1, 1]} : vector<8x128xf32> to vector<1x128xf32>
    %4 = vector.extract_strided_slice %2 {offsets = [1, 0], sizes = [1, 128], strides = [1, 1]} : vector<8x128xf32> to vector<1x128xf32>
    %5 = vector.extract_strided_slice %2 {offsets = [2, 0], sizes = [1, 128], strides = [1, 1]} : vector<8x128xf32> to vector<1x128xf32>
    %6 = vector.extract_strided_slice %2 {offsets = [3, 0], sizes = [1, 128], strides = [1, 1]} : vector<8x128xf32> to vector<1x128xf32>
    %c0_3 = arith.constant 0 : index
    %c0_4 = arith.constant 0 : index
    %7 = vector.load %arg3[%c0_3, %c0_4] : memref<384x128xbf16, #tpu.memory_space<vmem>>, vector<128x128xbf16>
    %c128 = arith.constant 128 : index
    %c0_5 = arith.constant 0 : index
    %8 = vector.load %arg3[%c128, %c0_5] : memref<384x128xbf16, #tpu.memory_space<vmem>>, vector<128x128xbf16>
    %c256 = arith.constant 256 : index
    %c0_6 = arith.constant 0 : index
    %9 = vector.load %arg3[%c256, %c0_6] : memref<384x128xbf16, #tpu.memory_space<vmem>>, vector<128x128xbf16>
    %c0_7 = arith.constant 0 : index
    %c0_8 = arith.constant 0 : index
    %10 = vector.load %arg2[%c0_7, %c0_8] : memref<784x128xbf16, #tpu.memory_space<vmem>>, vector<784x128xbf16>
    %cst = arith.constant dense<0.000000e+00> : vector<16x128xf32>
    %11 = tpu.matmul %1, %10, %cst {dimension_numbers = #tpu.dot_dimension_numbers<[1], [0], [0], [1], [0, 0, 1, 1], [], []>} : vector<16x784xbf16>, vector<784x128xbf16>, vector<16x128xf32> -> vector<16x128xf32>
    %12 = vector.broadcast %3 : vector<1x128xf32> to vector<16x128xf32>
    %13 = arith.addf %11, %12 : vector<16x128xf32>
    %14 = arith.negf %13 : vector<16x128xf32>
    %15 = math.exp %14 : vector<16x128xf32>
    %cst_9 = arith.constant 1.000000e+00 : f32
    %16 = vector.broadcast %cst_9 : f32 to vector<16x128xf32>
    %17 = arith.addf %16, %15 : vector<16x128xf32>
    %18 = arith.divf %16, %17 : vector<16x128xf32>
    %19 = arith.truncf %18 : vector<16x128xf32> to vector<16x128xbf16>
    %cst_10 = arith.constant dense<0.000000e+00> : vector<16x128xf32>
    %20 = tpu.matmul %19, %7, %cst_10 {dimension_numbers = #tpu.dot_dimension_numbers<[1], [0], [0], [1], [0, 0, 1, 1], [], []>} : vector<16x128xbf16>, vector<128x128xbf16>, vector<16x128xf32> -> vector<16x128xf32>
    %21 = vector.broadcast %4 : vector<1x128xf32> to vector<16x128xf32>
    %22 = arith.addf %20, %21 : vector<16x128xf32>
    %23 = arith.negf %22 : vector<16x128xf32>
    %24 = math.exp %23 : vector<16x128xf32>
    %cst_11 = arith.constant 1.000000e+00 : f32
    %25 = vector.broadcast %cst_11 : f32 to vector<16x128xf32>
    %26 = arith.addf %25, %24 : vector<16x128xf32>
    %27 = arith.divf %25, %26 : vector<16x128xf32>
    %28 = arith.truncf %27 : vector<16x128xf32> to vector<16x128xbf16>
    %cst_12 = arith.constant dense<0.000000e+00> : vector<16x128xf32>
    %29 = tpu.matmul %28, %8, %cst_12 {dimension_numbers = #tpu.dot_dimension_numbers<[1], [0], [0], [1], [0, 0, 1, 1], [], []>} : vector<16x128xbf16>, vector<128x128xbf16>, vector<16x128xf32> -> vector<16x128xf32>
    %30 = vector.broadcast %5 : vector<1x128xf32> to vector<16x128xf32>
    %31 = arith.addf %29, %30 : vector<16x128xf32>
    %32 = arith.negf %31 : vector<16x128xf32>
    %33 = math.exp %32 : vector<16x128xf32>
    %cst_13 = arith.constant 1.000000e+00 : f32
    %34 = vector.broadcast %cst_13 : f32 to vector<16x128xf32>
    %35 = arith.addf %34, %33 : vector<16x128xf32>
    %36 = arith.divf %34, %35 : vector<16x128xf32>
    %37 = arith.truncf %36 : vector<16x128xf32> to vector<16x128xbf16>
    %cst_14 = arith.constant dense<0.000000e+00> : vector<16x128xf32>
    %38 = tpu.matmul %37, %9, %cst_14 {dimension_numbers = #tpu.dot_dimension_numbers<[1], [0], [0], [1], [0, 0, 1, 1], [], []>} : vector<16x128xbf16>, vector<128x128xbf16>, vector<16x128xf32> -> vector<16x128xf32>
    %39 = vector.broadcast %6 : vector<1x128xf32> to vector<16x128xf32>
    %40 = arith.addf %38, %39 : vector<16x128xf32>
    %41 = arith.truncf %40 : vector<16x128xf32> to vector<16x128xbf16>
    %c0_15 = arith.constant 0 : index
    %c0_16 = arith.constant 0 : index
    %42 = vector.load %arg5[%c0_15, %c0_16] : memref<16x128xbf16, #tpu.memory_space<vmem>>, vector<16x128xbf16>
    tpu.vector_store %arg5[%c0_15, %c0_16], %41 {strides = array<i32>} : memref<16x128xbf16, #tpu.memory_space<vmem>>, vector<16x128xbf16>,
    return
  }
  func.func @transform_0(%arg0: i32) -> (i32, i32) {
    %c0_i32 = arith.constant 0 : i32
    %c0_i32_0 = arith.constant 0 : i32
    return %arg0, %c0_i32 : i32, i32
  }
  func.func @transform_1(%arg0: i32) -> (i32, i32) {
    %c0_i32 = arith.constant 0 : i32
    %c0_i32_0 = arith.constant 0 : i32
    %c0_i32_1 = arith.constant 0 : i32
    return %c0_i32, %c0_i32_0 : i32, i32
  }
  func.func @transform_2(%arg0: i32) -> (i32, i32) {
    %c0_i32 = arith.constant 0 : i32
    %c0_i32_0 = arith.constant 0 : i32
    %c0_i32_1 = arith.constant 0 : i32
    return %c0_i32, %c0_i32_0 : i32, i32
  }
  func.func @transform_3(%arg0: i32) -> (i32, i32) {
    %c0_i32 = arith.constant 0 : i32
    %c0_i32_0 = arith.constant 0 : i32
    %c0_i32_1 = arith.constant 0 : i32
    return %c0_i32, %c0_i32_0 : i32, i32
  }
  func.func @transform_4(%arg0: i32) -> (i32, i32) {
    %c0_i32 = arith.constant 0 : i32
    %c0_i32_0 = arith.constant 0 : i32
    return %arg0, %c0_i32 : i32, i32
  }
}

</mosaic_0001>

<bundles_post_ra>
// kernel: our_mlp_forward.1
= control target key start
LH: loop header
LB: loop body
LE: loop exit
PB: predicated region body
PF: predicated region fallthrough
CT: control target
= control target key end

     0   :  { %v1333_v43 = vmov 0.0   ;;  %vm1334_vm0 = vmmov 0   ;;  %vm484_vm1 = vcmask 130048   ;;  %s1672_s1 = inlined_call_operand.vmem [shape: bf16[784,128], index: 1, kind: input, shape index: {}]   ;;  %s1673_s0 = inlined_call_operand.vmem [shape: f32[16,784], index: 0, kind: input, shape index: {}]   ;;  %s1674_s2 = inlined_call_operand.vmem [shape: bf16[384,128], index: 2, kind: input, shape index: {}]   ;;  %s1675_s3 = inlined_call_operand.vmem [shape: f32[8,128], index: 3, kind: input, shape index: {}]   ;;  %s1676_s4 = inlined_call_operand.vmem [shape: bf16[16,128], index: 4, kind: output, shape index: {}]  }
   0x1   :  { %v1236_v0 = vld [vmem:[%s1672_s1 + $0x78] sm:$0xff]   ;;  %v1240_v4 = vld [vmem:[%s1672_s1 + $0x70] sm:$0xff]   ;;  %v1244_v8 = vld [vmem:[%s1672_s1 + $0x68] sm:$0xff]  }
   0x2   :  { %v1237_v1 = vld [vmem:[%s1672_s1 + $0x38] sm:$0xff]   ;;  %1073 = vmatprep.subr.bf16.mxu0 %v1236_v0  ;;  %v1241_v5 = vld [vmem:[%s1672_s1 + $0x30] sm:$0xff]   ;;  %v1245_v9 = vld [vmem:[%s1672_s1 + $0x28] sm:$0xff]  }
   0x3   :  { %v1238_v2 = vld [vmem:[%s1672_s1 + $0xf8] sm:$0xff]   ;;  %1074 = vmatpush3.bf16.msra.mxu0 %v1237_v1  ;;  %v1242_v6 = vld [vmem:[%s1672_s1 + $0xf0] sm:$0xff]   ;;  %v1246_v10 = vld [vmem:[%s1672_s1 + $0xe8] sm:$0xff]  }
   0x4   :  { %v1239_v3 = vld [vmem:[%s1672_s1 + $0xb8] sm:$0xff]   ;;  %1095 = vmatprep.subr.bf16.mxu1 %v1238_v2  ;;  %1075 = vmatprep.subr.bf16.mxu0 %v1240_v4  ;;  %v1243_v7 = vld [vmem:[%s1672_s1 + $0xb0] sm:$0xff]   ;;  %v1247_v11 = vld [vmem:[%s1672_s1 + $0xa8] sm:$0xff]  }
   0x5   :  { %1096 = vmatpush3.bf16.msra.mxu1 %v1239_v3  ;;  %v1248_v12 = vld [vmem:[%s1672_s1 + $0x60] sm:$0xff]   ;;  %v1252_v16 = vld [vmem:[%s1672_s1 + $0x58] sm:$0xff]   ;;  %v1256_v20 = vld [vmem:[%s1672_s1 + $0x50] sm:$0xff]  }
   0x6   :  { %1097 = vmatprep.subr.bf16.mxu1 %v1242_v6  ;;  %v1249_v13 = vld [vmem:[%s1672_s1 + $0x20] sm:$0xff]   ;;  %v1253_v17 = vld [vmem:[%s1672_s1 + $0x18] sm:$0xff]   ;;  %v1257_v21 = vld [vmem:[%s1672_s1 + $0x10] sm:$0xff]  }
   0x7   :  { %1076 = vmatpush3.bf16.msra.mxu0 %v1241_v5  ;;  %v1250_v14 = vld [vmem:[%s1672_s1 + $0xe0] sm:$0xff]   ;;  %v1254_v18 = vld [vmem:[%s1672_s1 + $0xd8] sm:$0xff]   ;;  %v1258_v22 = vld [vmem:[%s1672_s1 + $0xd0] sm:$0xff]  }
   0x8   :  { %1077 = vmatprep.subr.bf16.mxu0 %v1244_v8  ;;  %v1251_v15 = vld [vmem:[%s1672_s1 + $0xa0] sm:$0xff]   ;;  %v1255_v19 = vld [vmem:[%s1672_s1 + $0x98] sm:$0xff]   ;;  %v1259_v23 = vld [vmem:[%s1672_s1 + $0x90] sm:$0xff]  }
   0x9   :  { %1098 = vmatpush3.bf16.msra.mxu1 %v1243_v7  ;;  %v1260_v24 = vld [vmem:[%s1672_s1 + $0x48] sm:$0xff]   ;;  %v1264_v28 = vld [vmem:[%s1672_s1 + $0x40] sm:$0xff]   ;;  %v25_v36 = vld [vmem:[%s1673_s0 + $0x38] sm:$0xff] }
   0xa   :  { %1099 = vmatprep.subr.bf16.mxu1 %v1246_v10  ;;  %v1261_v25 = vld [vmem:[%s1672_s1 + $0x8] sm:$0xff]   ;;  %v1265_v29 = vld [vmem:[%s1672_s1] sm:$0xff]   ;;  %v1268_v38 = vld [vmem:[%s1672_s1 + $0x178] sm:$0xff]  }
   0xb   :  { %1078 = vmatpush3.bf16.msra.mxu0 %v1245_v9  ;;  %v1262_v26 = vld [vmem:[%s1672_s1 + $0xc8] sm:$0xff]   ;;  %v1266_v30 = vld [vmem:[%s1672_s1 + $0xc0] sm:$0xff]   ;;  %v21_v39 = vld [vmem:[%s1673_s0 + $0x18] sm:$0xff] }
   0xc   :  { %1079 = vmatprep.subr.bf16.mxu0 %v1248_v12  ;;  %v1263_v27 = vld [vmem:[%s1672_s1 + $0x88] sm:$0xff]   ;;  %v26_v32 = vld [vmem:[%s1673_s0 + $0x40] sm:$0xff]  ;;  %v28_v40 = vld [vmem:[%s1673_s0 + $0x50] sm:$0xff] }
   0xd   :  { %1100 = vmatpush3.bf16.msra.mxu1 %v1247_v11  ;;  %v19_v31 = vld [vmem:[%s1673_s0 + $0x8] sm:$0xff]  ;;  %v1267_v34 = vld [vmem:[%s1672_s1 + $0x80] sm:$0xff]   ;;  %v35_v41 = vpack.c.bf16 %v28_v40, %v21_v39  ;;  %v1269_v42 = vld [vmem:[%s1672_s1 + $0x138] sm:$0xff]  }
   0xe   :  { %1101 = vmatprep.subr.bf16.mxu1 %v1250_v14  ;;  %v33_v33 = vpack.c.bf16 %v26_v32, %v19_v31  ;;  %v18_v35 = vld [vmem:[%s1673_s0] sm:$0xff]  ;;  %v20_v44 = vld [vmem:[%s1673_s0 + $0x10] sm:$0xff]  ;;  %v27_v45 = vld [vmem:[%s1673_s0 + $0x48] sm:$0xff] }
   0xf   :  { %1080 = vmatpush3.bf16.msra.mxu0 %v1249_v13  ;;  %v32_v37 = vpack.c.bf16 %v25_v36, %v18_v35  ;;  %561 = vmatprep.mubr.bf16.mxu1 %v35_v41  ;;  %v34_v46 = vpack.c.bf16 %v27_v45, %v20_v44  ;;  %v1270_v47 = vld [vmem:[%s1672_s1 + $0x170] sm:$0xff]   ;;  %v1272_v49 = vld [vmem:[%s1672_s1 + $0x168] sm:$0xff]   ;;  %v1274_v51 = vld [vmem:[%s1672_s1 + $0x160] sm:$0xff]  }
  0x10   :  { %1081 = vmatprep.subr.bf16.mxu0 %v1252_v16  ;;  %520 = vmatprep.mubr.bf16.mxu0 %v33_v33  ;;  %v1271_v48 = vld [vmem:[%s1672_s1 + $0x130] sm:$0xff]   ;;  %v1273_v50 = vld [vmem:[%s1672_s1 + $0x128] sm:$0xff]   ;;  %v1275_v52 = vld [vmem:[%s1672_s1 + $0x120] sm:$0xff]  }
  0x11   :  { %1102 = vmatpush3.bf16.msra.mxu1 %v1251_v15  ;;  %v1276_v53 = vld [vmem:[%s1672_s1 + $0x158] sm:$0xff]   ;;  %v1278_v55 = vld [vmem:[%s1672_s1 + $0x150] sm:$0xff]   ;;  %v1284_v56 = vld [vmem:[%s1672_s1 + $0x180] sm:$0xff]  }
  0x12   :  { %1103 = vmatprep.subr.bf16.mxu1 %v1254_v18  ;;  %v1277_v54 = vld [vmem:[%s1672_s1 + $0x118] sm:$0xff]   ;;  %v23_v57 = vld [vmem:[%s1673_s0 + $0x28] sm:$0xff]  ;;  %v30_v58 = vld [vmem:[%s1673_s0 + $0x60] sm:$0xff]  ;;  %v186_v18 = vlaneseq }
  0x13   :  { %1082 = vmatpush3.bf16.msra.mxu0 %v1253_v17  ;;  %v1279_v59 = vld [vmem:[%s1672_s1 + $0x110] sm:$0xff]   ;;  %v37_v60 = vpack.c.bf16 %v30_v58, %v23_v57  ;;  %v31_v62 = vld [vmem:[%s1673_s0 + $0x68] sm:$0xff]  ;;  %v1282_v2 = vld [vmem:[%s1672_s1 + $0x140] sm:$0xff]  }
  0x14   :  { %1083 = vmatprep.subr.bf16.mxu0 %v1256_v20  ;;  %v24_v61 = vld [vmem:[%s1673_s0 + $0x30] sm:$0xff]  ;;  %v1280_v63 = vld [vmem:[%s1672_s1 + $0x148] sm:$0xff]   ;;  %v1283_v3 = vld [vmem:[%s1672_s1 + $0x100] sm:$0xff]  }
  0x15   :  { %1104 = vmatpush3.bf16.msra.mxu1 %v1255_v19  ;;  %v38_v0 = vpack.c.bf16 %v31_v62, %v24_v61  ;;  %v1281_v1 = vld [vmem:[%s1672_s1 + $0x108] sm:$0xff]   ;;  %v22_v4 = vld [vmem:[%s1673_s0 + $0x20] sm:$0xff]  ;;  %v29_v5 = vld [vmem:[%s1673_s0 + $0x58] sm:$0xff] }
  0x16   :  { %1105 = vmatprep.subr.bf16.mxu1 %v1258_v22  ;;  %v36_v6 = vpack.c.bf16 %v29_v5, %v22_v4  ;;  %v1285_v7 = vld [vmem:[%s1674_s2 + $0x38] sm:$0xff]   ;;  %v1286_v8 = vld [vmem:[%s1674_s2 + $0x30] sm:$0xff]   ;;  %v1287_v9 = vld [vmem:[%s1674_s2 + $0x28] sm:$0xff]  }
  0x17   :  { %1084 = vmatpush3.bf16.msra.mxu0 %v1257_v21  ;;  %v1288_v10 = vld [vmem:[%s1674_s2 + $0x20] sm:$0xff]   ;;  %v1289_v11 = vld [vmem:[%s1674_s2 + $0x18] sm:$0xff]   ;;  %v1290_v12 = vld [vmem:[%s1674_s2 + $0x10] sm:$0xff]   ;;  %v1590_v21 = vshrl.u32 %v186_v18, 7 }
  0x18   :  { %1085 = vmatprep.subr.bf16.mxu0 %v1260_v24  ;;  %v1291_v13 = vld [vmem:[%s1674_s2 + $0x8] sm:$0xff]   ;;  %v1292_v14 = vld [vmem:[%s1674_s2] sm:$0xff]   ;;  %v1294_v61 = vld [vmem:[%s1674_s2 + $0x70] sm:$0xff]  }
  0x19   :  { %1106 = vmatpush3.bf16.msra.mxu1 %v1259_v23  ;;  %v1295_v62 = vld [vmem:[%s1674_s2 + $0x68] sm:$0xff]   ;;  %v667_v4 = vsub.s32 1, %v1590_v21 }
  0x1a   :  { %1107 = vmatprep.subr.bf16.mxu1 %v1262_v26  ;;  %v1596_v26 = vld [vmem:[%s1675_s3] sm:$0xff] }
  0x1b   :  { %1086 = vmatpush3.bf16.msra.mxu0 %v1261_v25  ;;  %v188_v25 = vsub.s32 0, %v1590_v21  ;;  %v668_v5 = vrot.slane %v1596_v26, %v667_v4 }
  0x1c   :  { %1087 = vmatprep.subr.bf16.mxu0 %v1264_v28 }
  0x1d   :  { %1108 = vmatpush3.bf16.msra.mxu1 %v1263_v27 }
  0x1e   :  { %1109 = vmatprep.subr.bf16.mxu1 %v1266_v30  ;;  %v189_v30 = vrot.slane %v1596_v26, %v188_v25  ;;  %v1304_v25 = vld [vmem:[%s1674_s2 + $0xa0] sm:$0xff]  }
  0x1f   :  { %1088 = vmatpush3.bf16.msra.mxu0 %v1265_v29 }
  0x20   :  { %1117 = vmatprep.subr.bf16.mxu0 %v1268_v38 }
  0x21   :  { %1110 = vmatpush3.bf16.msra.mxu1 %v1267_v34 }
  0x22   :  { %1168 = vmatprep.subr.bf16.mxu1 %v1333_v43  ;;  %521 = vmatmul.mubr.bf16.vlgmr.msra.gmra.mxu0 %v32_v37 }
  0x23   :  { %1118 = vmatpush3.bf16.msra.mxu0 %v1269_v42  ;;  %602 = vmatprep.mubr.bf16.mxu0 %v37_v60  ;;  %v1293_v60 = vld [vmem:[%s1674_s2 + $0x78] sm:$0xff]  }
  0x24   :  { %562 = vmatmul.mubr.bf16.vlgmr.msra.gmra.mxu1 %v34_v46  ;;  %1119 = vmatprep.subr.bf16.mxu0 %v1270_v47 }
  0x25   :  { %1170 = vmatprep.mubr.msk.bf16.mxu1 %vm1334_vm0, %v1333_v43  ;;  %1169 = vmatpush3.bf16.msra.mxu1 %v1284_v56 }
  0x26   :  { %1174 = vmatprep.subr.bf16.mxu1 %v1333_v43 }
  0x27   :  { %1120 = vmatpush3.bf16.msra.mxu0 %v1271_v48 }
  0x28   :  { %1121 = vmatprep.subr.bf16.mxu0 %v1272_v49 }
  0x2b   :  { %1122 = vmatpush3.bf16.msra.mxu0 %v1273_v50 }
  0x2c   :  { %1123 = vmatprep.subr.bf16.mxu0 %v1274_v51  ;;  %1171 = vmatmul.mubr.msk.bf16.vlgmr.msra.gmra.mxu1 %vm484_vm1, %v38_v0  ;;  %v1297_v0 = vld [vmem:[%s1674_s2 + $0x58] sm:$0xff]  }
  0x2d   :  { %1190 = vmatprep.mubr.msk.bf16.mxu1 %vm1334_vm0, %v1333_v43  ;;  %1175 = vmatpush3.bf16.msra.mxu1 %v1285_v7 }
  0x2e   :  { %1176 = vmatprep.subr.bf16.mxu1 %v1333_v43 }
  0x2f   :  { %1124 = vmatpush3.bf16.msra.mxu0 %v1275_v52 }
  0x30   :  { %1125 = vmatprep.subr.bf16.mxu0 %v1276_v53 }
  0x31   :  { %1177 = vmatpush3.bf16.msra.mxu1 %v1286_v8 }
  0x32   :  { %1178 = vmatprep.subr.bf16.mxu1 %v1333_v43 }
  0x33   :  { %1126 = vmatpush3.bf16.msra.mxu0 %v1277_v54 }
  0x34   :  { %1127 = vmatprep.subr.bf16.mxu0 %v1278_v55 }
  0x35   :  { %1179 = vmatpush3.bf16.msra.mxu1 %v1287_v9 }
  0x36   :  { %1180 = vmatprep.subr.bf16.mxu1 %v1333_v43 }
  0x37   :  { %1128 = vmatpush3.bf16.msra.mxu0 %v1279_v59 }
  0x38   :  { %1129 = vmatprep.subr.bf16.mxu0 %v1280_v63  ;;  %v1296_v63 = vld [vmem:[%s1674_s2 + $0x60] sm:$0xff]  }
  0x39   :  { %1181 = vmatpush3.bf16.msra.mxu1 %v1288_v10 }
  0x3a   :  { %1182 = vmatprep.subr.bf16.mxu1 %v1333_v43 }
  0x3b   :  { %1130 = vmatpush3.bf16.msra.mxu0 %v1281_v1  ;;  %v1298_v1 = vld [vmem:[%s1674_s2 + $0x50] sm:$0xff]  }
  0x3c   :  { %1131 = vmatprep.subr.bf16.mxu0 %v1282_v2  ;;  %v1299_v2 = vld [vmem:[%s1674_s2 + $0x48] sm:$0xff]  }
  0x3d   :  { %1183 = vmatpush3.bf16.msra.mxu1 %v1289_v11 }
  0x3e   :  { %1184 = vmatprep.subr.bf16.mxu1 %v1333_v43 }
  0x3f   :  { %1132 = vmatpush3.bf16.msra.mxu0 %v1283_v3  ;;  %v1300_v3 = vld [vmem:[%s1674_s2 + $0x40] sm:$0xff]  }
  0x40   :  { %1194 = vmatprep.subr.bf16.mxu0 %v1333_v43 }
  0x41   :  { %1185 = vmatpush3.bf16.msra.mxu1 %v1290_v12 }
  0x42   :  { %603 = vmatmul.mubr.bf16.vlgmr.msra.gmra.mxu0 %v36_v6  ;;  %1186 = vmatprep.subr.bf16.mxu1 %v1333_v43 }
  0x43   :  { %1210 = vmatprep.mubr.msk.bf16.mxu0 %vm1334_vm0, %v1333_v43  ;;  %1195 = vmatpush3.bf16.msra.mxu0 %v1293_v60 }
  0x44   :  { %1196 = vmatprep.subr.bf16.mxu0 %v1333_v43 }
  0x45   :  { %1187 = vmatpush3.bf16.msra.mxu1 %v1291_v13 }
  0x46   :  { %1188 = vmatprep.subr.bf16.mxu1 %v1333_v43 }
  0x47   :  { %1197 = vmatpush3.bf16.msra.mxu0 %v1294_v61 }
  0x48   :  { %1198 = vmatprep.subr.bf16.mxu0 %v1333_v43 }
  0x49   :  { %1189 = vmatpush3.bf16.msra.mxu1 %v1292_v14 }
  0x4a   :  { %1214 = vmatprep.subr.bf16.mxu1 %v1333_v43 }
  0x4b   :  { %1199 = vmatpush3.bf16.msra.mxu0 %v1295_v62 }
  0x4c   :  { %1200 = vmatprep.subr.bf16.mxu0 %v1333_v43 }
  0x4f   :  { %1201 = vmatpush3.bf16.msra.mxu0 %v1296_v63 }
  0x50   :  { %1202 = vmatprep.subr.bf16.mxu0 %v1333_v43 }
  0x53   :  { %1203 = vmatpush3.bf16.msra.mxu0 %v1297_v0 }
  0x54   :  { %1204 = vmatprep.subr.bf16.mxu0 %v1333_v43 }
  0x57   :  { %1205 = vmatpush3.bf16.msra.mxu0 %v1298_v1 }
  0x58   :  { %1206 = vmatprep.subr.bf16.mxu0 %v1333_v43 }
  0x5b   :  { %1207 = vmatpush3.bf16.msra.mxu0 %v1299_v2 }
  0x5c   :  { %1208 = vmatprep.subr.bf16.mxu0 %v1333_v43 }
  0x5f   :  { %1209 = vmatpush3.bf16.msra.mxu0 %v1300_v3 }
  0xe2   :  { %v1089_v19 = vpop.f32.mrf.mxu0 }
  0xe4   :  { %v1111_v15 = vpop.f32.mrf.mxu1  ;;  %v1090_v22 = vpop.f32.mrf.mxu0 }
  0xe5   :  { %v1091_v31 = vadd.f32 %v1090_v22, %v1089_v19  ;;  %v1301_v22 = vld [vmem:[%s1674_s2 + $0xb8] sm:$0xff]  }
  0xe6   :  { %v1112_v16 = vpop.f32.mrf.mxu1  ;;  %v1092_v27 = vpop.f32.mrf.mxu0 }
  0xe7   :  { %v523_v33 = vadd.f32 %v1091_v31, %v189_v30  ;;  %v1113_v34 = vadd.f32 %v1112_v16, %v1111_v15  ;;  %v773_v31 = vsub.s32 2, %v1590_v21 }
  0xe8   :  { %v1114_v17 = vpop.f32.mrf.mxu1  ;;  %v1093_v32 = vpop.f32.mrf.mxu0 }
  0xe9   :  { %v1094_v35 = vadd.f32 %v1093_v32, %v1092_v27  ;;  %v564_v38 = vadd.f32 %v1113_v34, %v523_v33  ;;  %v1305_v27 = vld [vmem:[%s1674_s2 + $0x98] sm:$0xff]   ;;  %v774_v32 = vrot.slane %v1596_v26, %v773_v31 }
  0xea   :  { %v1115_v20 = vpop.f32.mrf.mxu1 }
  0xeb   :  { %v526_v39 = vadd.f32 %v1094_v35, %v189_v30  ;;  %v1116_v40 = vadd.f32 %v1115_v20, %v1114_v17  ;;  %v1308_v30 = vld [vmem:[%s1674_s2 + $0x80] sm:$0xff]  }
  0xec   :  { %v645_v23 = vpop.f32.mrf.mxu1 }
  0xed   :  { %v567_v46 = vadd.f32 %v1116_v40, %v526_v39 }
  0xee   :  { %v1172_v24 = vpop.f32.mrf.mxu1 }
  0xef   :  { %v1303_v24 = vld [vmem:[%s1674_s2 + $0xa8] sm:$0xff]  }
  0xf0   :  { %v648_v28 = vpop.f32.mrf.mxu1 }
  0xf2   :  { %v1173_v29 = vpop.f32.mrf.mxu1 }
  0xf3   :  { %v1307_v29 = vld [vmem:[%s1674_s2 + $0x88] sm:$0xff]  }
 0x102   :  { %v1133_v36 = vpop.f32.mrf.mxu0 }
 0x104   :  { %v1134_v37 = vpop.f32.mrf.mxu0 }
 0x105   :  { %v1135_v41 = vadd.f32 %v1134_v37, %v1133_v36 }
 0x106   :  { %v1136_v42 = vpop.f32.mrf.mxu0 }
 0x107   :  { %v605_v44 = vadd.f32 %v1135_v41, %v564_v38 }
 0x108   :  { %v1137_v45 = vpop.f32.mrf.mxu0 }
 0x109   :  { %v646_v47 = vadd.f32 %v645_v23, %v605_v44  ;;  %v1138_v48 = vadd.f32 %v1137_v45, %v1136_v42  ;;  %v1302_v23 = vld [vmem:[%s1674_s2 + $0xb0] sm:$0xff]  }
 0x10b   :  { %v1034_v49 = vmul.f32 -1.442695, %v646_v47  ;;  %v608_v50 = vadd.f32 %v1138_v48, %v567_v46  ;;  %v879_v48 = vsub.s32 3, %v1590_v21 }
 0x10d   :  { %1309 = vpow2.f32 %v1034_v49  ;;  %v649_v51 = vadd.f32 %v648_v28, %v608_v50  ;;  %v1306_v28 = vld [vmem:[%s1674_s2 + $0x90] sm:$0xff]   ;;  %v880_v50 = vrot.slane %v1596_v26, %v879_v48 }
 0x10f   :  { %v1035_v52 = vmul.f32 -1.442695, %v649_v51 }
 0x111   :  { %1311 = vpow2.f32 %v1035_v52 }
 0x11a   :  { %v1310_v53 = vpop.eup %1309 }
 0x11b   :  { %v658_v54 = vadd.f32 1.0, %v1310_v53 }
 0x11d   :  { %1313 = vrcp.f32 %v658_v54 }
 0x11e   :  { %v1312_v55 = vpop.eup %1311 }
 0x11f   :  { %v659_v56 = vadd.f32 1.0, %v1312_v55 }
 0x121   :  { %1315 = vrcp.f32 %v659_v56 }
 0x12a   :  { %v1314_v57 = vpop.eup %1313 }
 0x12e   :  { %v1316_v58 = vpop.eup %1315 }
 0x12f   :  { %v664_v59 = vpack.c.bf16 %v1316_v58, %v1314_v57 }
 0x131   :  { %1191 = vmatmul.mubr.bf16.vlgmr.msra.gmra.mxu1 %v664_v59 }
 0x132   :  { %1230 = vmatprep.mubr.msk.bf16.mxu1 %vm1334_vm0, %v1333_v43  ;;  %1215 = vmatpush3.bf16.msra.mxu1 %v1301_v22 }
 0x133   :  { %1216 = vmatprep.subr.bf16.mxu1 %v1333_v43 }
 0x136   :  { %1217 = vmatpush3.bf16.msra.mxu1 %v1302_v23 }
 0x137   :  { %1218 = vmatprep.subr.bf16.mxu1 %v1333_v43 }
 0x13a   :  { %1219 = vmatpush3.bf16.msra.mxu1 %v1303_v24 }
 0x13b   :  { %1220 = vmatprep.subr.bf16.mxu1 %v1333_v43 }
 0x13e   :  { %1221 = vmatpush3.bf16.msra.mxu1 %v1304_v25 }
 0x13f   :  { %1222 = vmatprep.subr.bf16.mxu1 %v1333_v43 }
 0x142   :  { %1223 = vmatpush3.bf16.msra.mxu1 %v1305_v27 }
 0x143   :  { %1224 = vmatprep.subr.bf16.mxu1 %v1333_v43 }
 0x146   :  { %1225 = vmatpush3.bf16.msra.mxu1 %v1306_v28 }
 0x147   :  { %1226 = vmatprep.subr.bf16.mxu1 %v1333_v43 }
 0x14a   :  { %1227 = vmatpush3.bf16.msra.mxu1 %v1307_v29 }
 0x14b   :  { %1228 = vmatprep.subr.bf16.mxu1 %v1333_v43 }
 0x14e   :  { %1229 = vmatpush3.bf16.msra.mxu1 %v1308_v30 }
 0x1f1   :  { %v751_v6 = vpop.f32.mrf.mxu1 }
 0x1f2   :  { %v752_v7 = vadd.f32 %v751_v6, %v668_v5 }
 0x1f3   :  { %v1192_v8 = vpop.f32.mrf.mxu1 }
 0x1f4   :  { %v1044_v9 = vmul.f32 -1.442695, %v752_v7 }
 0x1f5   :  { %v754_v10 = vpop.f32.mrf.mxu1 }
 0x1f6   :  { %1317 = vpow2.f32 %v1044_v9  ;;  %v755_v11 = vadd.f32 %v754_v10, %v668_v5 }
 0x1f7   :  { %v1193_v12 = vpop.f32.mrf.mxu1 }
 0x1f8   :  { %v1045_v13 = vmul.f32 -1.442695, %v755_v11 }
 0x1fa   :  { %1319 = vpow2.f32 %v1045_v13 }
 0x203   :  { %v1318_v14 = vpop.eup %1317 }
 0x204   :  { %v764_v15 = vadd.f32 1.0, %v1318_v14 }
 0x206   :  { %1321 = vrcp.f32 %v764_v15 }
 0x207   :  { %v1320_v16 = vpop.eup %1319 }
 0x208   :  { %v765_v17 = vadd.f32 1.0, %v1320_v16 }
 0x20a   :  { %1323 = vrcp.f32 %v765_v17 }
 0x213   :  { %v1322_v18 = vpop.eup %1321 }
 0x217   :  { %v1324_v19 = vpop.eup %1323 }
 0x218   :  { %v770_v20 = vpack.c.bf16 %v1324_v19, %v1322_v18 }
 0x21a   :  { %1211 = vmatmul.mubr.bf16.vlgmr.msra.gmra.mxu0 %v770_v20 }
 0x2da   :  { %v857_v33 = vpop.f32.mrf.mxu0 }
 0x2db   :  { %v858_v34 = vadd.f32 %v857_v33, %v774_v32 }
 0x2dc   :  { %v1212_v35 = vpop.f32.mrf.mxu0 }
 0x2dd   :  { %v1054_v36 = vmul.f32 -1.442695, %v858_v34 }
 0x2de   :  { %v860_v37 = vpop.f32.mrf.mxu0 }
 0x2df   :  { %1325 = vpow2.f32 %v1054_v36  ;;  %v861_v38 = vadd.f32 %v860_v37, %v774_v32 }
 0x2e0   :  { %v1213_v39 = vpop.f32.mrf.mxu0 }
 0x2e1   :  { %v1055_v40 = vmul.f32 -1.442695, %v861_v38 }
 0x2e3   :  { %1327 = vpow2.f32 %v1055_v40 }
 0x2ec   :  { %v1326_v41 = vpop.eup %1325 }
 0x2ed   :  { %v870_v42 = vadd.f32 1.0, %v1326_v41 }
 0x2ef   :  { %1329 = vrcp.f32 %v870_v42 }
 0x2f0   :  { %v1328_v44 = vpop.eup %1327 }
 0x2f1   :  { %v871_v45 = vadd.f32 1.0, %v1328_v44 }
 0x2f3   :  { %1331 = vrcp.f32 %v871_v45 }
 0x2fc   :  { %v1330_v43 = vpop.eup %1329 }
 0x300   :  { %v1332_v46 = vpop.eup %1331 }
 0x301   :  { %v876_v47 = vpack.c.bf16 %v1332_v46, %v1330_v43 }
 0x303   :  { %1231 = vmatmul.mubr.bf16.vlgmr.msra.gmra.mxu1 %v876_v47 }
 0x3c3   :  { %v963_v49 = vpop.f32.mrf.mxu1 }
 0x3c4   :  { %v964_v53 = vadd.f32 %v963_v49, %v880_v50 }
 0x3c5   :  { %v1232_v51 = vpop.f32.mrf.mxu1 }
 0x3c7   :  { %v966_v52 = vpop.f32.mrf.mxu1 }
 0x3c8   :  { %v967_v54 = vadd.f32 %v966_v52, %v880_v50 }
 0x3c9   :  { %v1233_v55 = vpop.f32.mrf.mxu1 }
 0x3ca   :  { %v1071_v56 = vpack.c.bf16 %v967_v54, %v964_v53 }
 0x3cc   :  { %1072 = vst [vmem:[%s1676_s4] sm:$0xff] %v1071_v56  }

</bundles_post_ra>
